<compile_context>
chip_gen: v6e
topology: v6e:2x2x1
jax: 0.10.0
libtpu: 0.0.40
codegen_flags: <defaults>
</compile_context>

<pallas_src>
import functools

import jax
import jax.numpy as jnp
from jax import lax
from jax.experimental import pallas as pl
from jax.experimental.pallas import tpu as pltpu


def _judge_kernel(x_ref, w_ref, b_ref, out_ref, *, inv_j):
    # x_ref: (TB, F), w_ref: (J, F), b_ref: (J, 1), out_ref: (1, TB)
    x = x_ref[...]
    w = w_ref[...]
    b = b_ref[...]

    # z = W @ X^T + b  -> (J, TB); F contracted on the MXU, f32 accumulation.
    z = lax.dot_general(
        w, x,
        dimension_numbers=(((1,), (1,)), ((), ())),
        preferred_element_type=jnp.float32,
    ) + b

    # Confidentiate: sign(z) * z * z == z * |z|   (dense (J, TB) vregs).
    conf = z * jnp.abs(z)

    # Mean over judgeWay (axis 0: an 8-sublane reduce); 1/J is a compile-time
    # constant.  Result is a lane-dense (1, TB) row.
    out_ref[...] = (jnp.sum(conf, axis=0, keepdims=True) * inv_j).astype(
        out_ref.dtype)


def _round_up(n, m):
    return ((n + m - 1) // m) * m


def judge_net_forward(x, weight, bias, *, tile_b_max=16384, min_tiles=2):
    """Pallas implementation of JudgeNet.forward.

    x:      (B, fea_n)        float32
    weight: (judgeWay, fea_n) float32
    bias:   (judgeWay,)       float32
    returns (judge, weight) with judge of shape (B, 1)
    """
    B, F = x.shape
    J, F2 = weight.shape
    assert F == F2, (F, F2)

    x_f32 = x.astype(jnp.float32)
    w_f32 = weight.astype(jnp.float32)
    b2d = bias.reshape(J, 1).astype(jnp.float32)

    # --- Batch tiling -------------------------------------------------------
    # Enough tiles that each tile fits the cap; at least `min_tiles` tiles when
    # there is enough work so both v7x TensorCores get a share (harmless on the
    # single-TC v5e/v6e).  Padding waste is < 8 rows per tile.
    num_tiles = max(1, pl.cdiv(B, tile_b_max))
    num_tiles = max(num_tiles, min(min_tiles, pl.cdiv(B, 8)))
    TB = _round_up(pl.cdiv(B, num_tiles), 8)
    B_pad = num_tiles * TB
    if B_pad != B:
        # Zero-pad extra rows; their finite outputs are sliced off below.
        x_f32 = jnp.pad(x_f32, ((0, B_pad - B), (0, 0)))

    kernel = functools.partial(_judge_kernel, inv_j=float(1.0 / J))

    # --- Explicit VMEM budget (with headroom; safe on v7x's 64 MiB) ---------
    LANE, SUB = 128, 8
    x_buf = TB * _round_up(F, LANE) * 4          # lane-padded x tile
    out_buf = SUB * _round_up(TB, LANE) * 4      # (1, TB) row, sublane-padded
    w_buf = _round_up(J, SUB) * _round_up(F, LANE) * 4
    b_buf = _round_up(J, SUB) * LANE * 4
    vmem_needed = 2 * (x_buf + out_buf) + 2 * (w_buf + b_buf)
    vmem_limit = int(min(max(vmem_needed + (8 << 20), 32 << 20), 56 << 20))

    cost = pl.CostEstimate(
        flops=2 * B_pad * F * J + 3 * B_pad * J,
        transcendentals=0,
        bytes_accessed=B_pad * F * 4 + J * F * 4 + J * 4 + B_pad * 4,
    )

    judge_rows = pl.pallas_call(
        kernel,
        out_shape=jax.ShapeDtypeStruct((num_tiles, 1, TB), jnp.float32),
        grid_spec=pltpu.PrefetchScalarGridSpec(
            num_scalar_prefetch=0,
            grid=(num_tiles,),
            in_specs=[
                pl.BlockSpec((TB, F), lambda i: (i, 0)),   # x: streamed tiles
                pl.BlockSpec((J, F), lambda i: (0, 0)),    # W: resident
                pl.BlockSpec((J, 1), lambda i: (0, 0)),    # b: resident
            ],
            # Lane-dense (1, TB) output row per tile; tile index squeezed.
            out_specs=pl.BlockSpec((None, 1, TB), lambda i: (i, 0, 0)),
        ),
        compiler_params=pltpu.CompilerParams(
            dimension_semantics=("parallel",),   # megacore-shard batch tiles
            vmem_limit_bytes=vmem_limit,
        ),
        cost_estimate=cost,
    )(x_f32, w_f32, b2d)

    # Tiles are contiguous batch chunks in grid order, so a plain reshape
    # restores row order; padded rows are sliced off.
    judge = judge_rows.reshape(B_pad, 1)[:B]
    # PyTorch module also returns the raw linear weight as-is.
    return judge, weight


def _reference(x, weight, bias):
    z = x @ weight.T + bias
    return jnp.mean(jnp.sign(z) * z * z, axis=1, keepdims=True)


if __name__ == "__main__":
    # Small shapes consistent with the module: fea_n=32, judgeWay=8, batch=8.
    B, FEA_N, JUDGE_WAY = 8, 32, 8

    key = jax.random.PRNGKey(0)
    kx, kw, kb, kx2 = jax.random.split(key, 4)

    x = jax.random.normal(kx, (B, FEA_N), dtype=jnp.float32)
    # Deterministic parameter init (uniform like nn.Linear's default range).
    bound = 1.0 / (FEA_N ** 0.5)
    weight = jax.random.uniform(kw, (JUDGE_WAY, FEA_N),
                                minval=-bound, maxval=bound, dtype=jnp.float32)
    bias = jax.random.uniform(kb, (JUDGE_WAY,),
                              minval=-bound, maxval=bound, dtype=jnp.float32)

    judge, w_out = judge_net_forward(x, weight, bias)
    jax.block_until_ready((judge, w_out))

    judge_ref = _reference(x, weight, bias)
    assert judge.shape == (B, 1)
    assert w_out.shape == (JUDGE_WAY, FEA_N)
    assert jnp.allclose(judge, judge_ref, atol=1e-5, rtol=1e-5)

    # Secondary check: non-multiple batch with a multi-tile grid (exercises the
    # tiling + padding + lane-dense output path with a small tile cap).
    B2 = 1000
    x2 = jax.random.normal(kx2, (B2, FEA_N), dtype=jnp.float32)
    judge2, _ = judge_net_forward(x2, weight, bias, tile_b_max=256)
    jax.block_until_ready(judge2)
    judge2_ref = _reference(x2, weight, bias)
    assert judge2.shape == (B2, 1)
    assert jnp.allclose(judge2, judge2_ref, atol=1e-5, rtol=1e-5)

    print("KERNEL_OK")
</pallas_src>

<mosaic_0001>
module attributes {stable_mosaic.version = 11 : i64} {
  func.func @_judge_kernel(%arg0: i32, %arg1: memref<8x32xf32, #tpu.memory_space<vmem>>, %arg2: memref<8x32xf32, #tpu.memory_space<vmem>>, %arg3: memref<8x1xf32, #tpu.memory_space<vmem>>, %arg4: memref<1x1x8xf32, #tpu.memory_space<vmem>>) attributes {dimension_semantics = [#tpu.dimension_semantics<parallel>], iteration_bounds = array<i64: 1>, scalar_prefetch = 0 : i64, scratch_operands = 0 : i64, tpu.core_type = #tpu.core_type<tc>, window_params = [{transform_indices = @transform_0, window_bounds = array<i64: 8, 32>}, {pipeline_mode = #tpu.pipeline_mode<synchronous>, transform_indices = @transform_1, window_bounds = array<i64: 8, 32>}, {pipeline_mode = #tpu.pipeline_mode<synchronous>, transform_indices = @transform_2, window_bounds = array<i64: 8, 1>}, {transform_indices = @transform_3, window_bounds = array<i64: 1, 1, 8>}]} {
    %c0 = arith.constant 0 : index
    %c0_0 = arith.constant 0 : index
    %0 = vector.load %arg1[%c0, %c0_0] : memref<8x32xf32, #tpu.memory_space<vmem>>, vector<8x32xf32>
    %c0_1 = arith.constant 0 : index
    %c0_2 = arith.constant 0 : index
    %1 = vector.load %arg2[%c0_1, %c0_2] : memref<8x32xf32, #tpu.memory_space<vmem>>, vector<8x32xf32>
    %c0_3 = arith.constant 0 : index
    %c0_4 = arith.constant 0 : index
    %2 = vector.load %arg3[%c0_3, %c0_4] : memref<8x1xf32, #tpu.memory_space<vmem>>, vector<8x1xf32>
    %cst = arith.constant dense<0.000000e+00> : vector<8x8xf32>
    %3 = tpu.matmul %1, %0, %cst {dimension_numbers = #tpu.dot_dimension_numbers<[1], [1], [0], [0], [0, 0, 1, 0], [], []>} : vector<8x32xf32>, vector<8x32xf32>, vector<8x8xf32> -> vector<8x8xf32>
    %4 = vector.broadcast %2 : vector<8x1xf32> to vector<8x8xf32>
    %5 = arith.addf %3, %4 : vector<8x8xf32>
    %6 = math.absf %5 : vector<8x8xf32>
    %7 = arith.mulf %5, %6 : vector<8x8xf32>
    %cst_5 = arith.constant dense<0.000000e+00> : vector<8xf32>
    %8 = vector.multi_reduction <add>, %7, %cst_5 [0] : vector<8x8xf32> to vector<8xf32>
    %9 = vector.shape_cast %8 : vector<8xf32> to vector<1x8xf32>
    %cst_6 = arith.constant 1.250000e-01 : f32
    %10 = vector.broadcast %cst_6 : f32 to vector<1x8xf32>
    %11 = arith.mulf %9, %10 : vector<1x8xf32>
    %c0_7 = arith.constant 0 : index
    %c0_8 = arith.constant 0 : index
    %c0_9 = arith.constant 0 : index
    %12 = vector.load %arg4[%c0_7, %c0_8, %c0_9] : memref<1x1x8xf32, #tpu.memory_space<vmem>>, vector<1x1x8xf32>
    %13 = vector.shape_cast %12 : vector<1x1x8xf32> to vector<1x8xf32>
    %14 = vector.shape_cast %11 : vector<1x8xf32> to vector<1x1x8xf32>
    tpu.vector_store %arg4[%c0_7, %c0_8, %c0_9], %14 {strides = array<i32>} : memref<1x1x8xf32, #tpu.memory_space<vmem>>, vector<1x1x8xf32>,
    return
  }
  func.func @transform_0(%arg0: i32) -> (i32, i32) {
    %c0_i32 = arith.constant 0 : i32
    %c0_i32_0 = arith.constant 0 : i32
    return %arg0, %c0_i32 : i32, i32
  }
  func.func @transform_1(%arg0: i32) -> (i32, i32) {
    %c0_i32 = arith.constant 0 : i32
    %c0_i32_0 = arith.constant 0 : i32
    %c0_i32_1 = arith.constant 0 : i32
    return %c0_i32, %c0_i32_0 : i32, i32
  }
  func.func @transform_2(%arg0: i32) -> (i32, i32) {
    %c0_i32 = arith.constant 0 : i32
    %c0_i32_0 = arith.constant 0 : i32
    %c0_i32_1 = arith.constant 0 : i32
    return %c0_i32, %c0_i32_0 : i32, i32
  }
  func.func @transform_3(%arg0: i32) -> (i32, i32, i32) {
    %c0_i32 = arith.constant 0 : i32
    %c0_i32_0 = arith.constant 0 : i32
    %c0_i32_1 = arith.constant 0 : i32
    return %arg0, %c0_i32, %c0_i32_0 : i32, i32, i32
  }
}

</mosaic_0001>

<bundles_post_ra>
// kernel: tpu_custom_call.1
= control target key start
LH: loop header
LB: loop body
LE: loop exit
PB: predicated region body
PF: predicated region fallthrough
CT: control target
= control target key end

     0   :  { %8 = vsyncpa [#allocation3], 0  ;;  %s236_s0 = inlined_call_operand.vmem [shape: f32[8,32], index: 0, kind: input, shape index: {}]   ;;  %s237_s1 = inlined_call_operand.hbm [shape: f32[8,32], index: 1, kind: input, shape index: {}]   ;;  %s238_s2 = inlined_call_operand.vmem [shape: f32[8,1], index: 2, kind: input, shape index: {}]   ;;  %s239_s3 = inlined_call_operand.hbm [shape: f32[1,1,8], index: 3, kind: output, shape index: {}]  }
   0x1   :  { %9 = vsyncpa [#allocation4], 0  ;;  %s199_s12 = smov [#allocation2]  }
   0x2   :  { %s18_s13 = sshll.u32 %s199_s12, 4  ;;  %s19_s13 = int_to_ptr.vmem [resolvable:$true] %s18_s13 }
   0x3   :  { %s163_s14 = scalar_lea.vmem %s19_s13, 128  ;;  %p168_p1 = scmp.lt.s32.totalorder %s19_s13, %s19_s13 }
   0x4   :  { %p164_p0 = scmp.ne.s32.totalorder %s19_s13, %s163_s14  ;;  %p169_p2 = scmp.lt.s32.totalorder %s163_s14, %s163_s14 }
   0x6   :  { %p170_p3 = por %p169_p2, %p168_p1 }
   0x8   :  { %p171_p4 = pnand %p170_p3, %p164_p0 }
   0xa   :  { %174 = shalt.err (!%p171_p4)
}
   0xb   :  { %21 = dma.hbm_to_vmem [thread:$0]  %s237_s1, 128, %s19_s13, [#allocation3]  }
   0xc   :  { %195 = dma.done.wait [#allocation3], 128  }
   0xd   :  { %196 = vsyncadd [#allocation3], 4294967168  ;;  %v200_v0 = vmov 0.0   ;;  %vm201_vm0 = vmmov 0   ;;  %v202_v1 = vmov 0   ;;  %vm35_vm1 = vcmask 261120  }
   0xe   :  { %144 = vmatprep.subr.mxu0 %v200_v0  ;;  %146 = vmatprep.mubr.msk.f32.mxu0 %vm201_vm0, %v200_v0  ;;  %v27_v2 = vld [vmem:[%s236_s0] sm:$0xff]  ;;  %vm114_vm2 = vcmask 64512   ;;  %s203_s0 = smov [#allocation5]   ;;  %vm123_vm3 = vcmask 57344  }
   0xf   :  { %154 = vset.pattern.permute.xlu0 %v202_v1  ;;  %v29_v3 = vld [vmem:[%s238_s2] sm:$0xff]  ;;  %145 = vmatpush3.xpose.msk.msra.mxu0 %vm35_vm1, %v27_v2  ;;  %s131_s1 = sshll.u32 %s203_s0, 4  ;;  %s132_s1 = int_to_ptr.vmem [resolvable:$true] %s131_s1 }
  0x10   :  { %v28_v4 = vld [vmem:[#allocation2] sm:$0xff]  ;;  %32 = vperm.xlu0 %154, %v29_v3   ;;  %s175_s2 = scalar_lea.vmem %s132_s1, 16  ;;  %s179_s21 = scalar_lea.vmem %s132_s1, 32 }
  0x11   :  { %p176_p5 = scmp.ne.s32.totalorder %s132_s1, %s175_s2  ;;  %p180_p6 = scmp.lt.s32.totalorder %s132_s1, %s132_s1 }
  0x12   :  { %147 = vmatmul.mubr.msk.f32.vlgmr.msra.gmra.mxu0 %vm35_vm1, %v28_v4  ;;  %p181_p7 = scmp.lt.s32.totalorder %s179_s21, %s175_s2 }
  0x14   :  { %p182_p8 = por %p181_p7, %p180_p6 }
  0x16   :  { %p183_p9 = pnand %p182_p8, %p176_p5 }
  0x8b   :  { %v33_v5 = vpop.permute.xlu0 %32 }
  0xd2   :  { %v108_v6 = vpop.f32.mrf.mxu0 }
  0xd3   :  { %v109_v7 = vadd.f32 %v108_v6, %v33_v5 }
  0xd4   :  { %v148_v8 = vpop.f32.mrf.mxu0 }
  0xd5   :  { %v112_v9 = vand.u32 2147483647, %v109_v7 }
  0xd7   :  { %v113_v10 = vmul.f32 %v112_v9, %v109_v7 }
  0xd9   :  { %v115_v11 = vsel %vm114_vm2, %v113_v10, 0.0 }
  0xda   :  { %v116_v12 = vrot.slane %v115_v11, 4 }
  0xdc   :  { %v117_v13 = vadd.f32 %v116_v12, %v115_v11 }
  0xde   :  { %v118_v14 = vrot.slane %v117_v13, 2 }
  0xe0   :  { %v119_v15 = vadd.f32 %v118_v14, %v117_v13 }
  0xe2   :  { %v120_v16 = vrot.slane %v119_v15, 1 }
  0xe4   :  { %v121_v17 = vadd.f32 %v120_v16, %v119_v15 }
  0xe6   :  { %v122_v18 = vmul.f32 0.125, %v121_v17 }
  0xe8   :  { %124 = vst.msk [vmem:[#allocation5] sm:$0x1] %vm123_vm3, %v122_v18 }
  0xe9   :  { %186 = shalt.err (!%p183_p9)
}
  0xea   :  { %134 = dma.vmem_to_hbm [thread:$0]  %s132_s1, 16, %s239_s3, [#allocation4]  }
  0xeb   :  { %197 = dma.done.wait [#allocation4], 16  }
  0xec   :  { %198 = vsyncadd [#allocation4], 4294967280 }
  0xed   :  { %138 = vsyncpa [#allocation3], 1 }
  0xee   :  { %139 = vsyncpa [#allocation4], 1 }

</bundles_post_ra>
